<compile_context>
chip_gen: v7x
topology: tpu7x:2x2x1
jax: 0.10.0
libtpu: 0.0.40
codegen_flags: <defaults>
</compile_context>

<pallas_src>
import math

import jax
import jax.numpy as jnp
from jax import lax
from jax.experimental import pallas as pl
from jax.experimental.pallas import tpu as pltpu

# ----- problem sizes (consistent with the module, scaled down) ---------------
BATCH = 2
SEQ = 8
IN_DIM = 32
ATT_DIM = 64
N_HEADS = 4
HEAD_DIM = ATT_DIM // N_HEADS        # 16
OUT_DIM = IN_DIM                     # out_dim defaults to in_dim -> real out_proj Linear

BHS = BATCH * N_HEADS * SEQ          # 64  (head-major row count: (b, h, s))
BS = BATCH * SEQ                     # 16  (output row count: (b, s))
EXP_DIM = N_HEADS * IN_DIM           # 128 (expanded contraction dim)
FUSED_N = EXP_DIM + OUT_DIM          # 160 (fused [W_s | W_vo] lane width)


def msa_kernel(x_ref, wsvo_ref, gt_ref, mask_ref, bo_ref, y_ref):
    # x_ref   : (BHS, EXP_DIM)     bf16  block-diagonal, head-replicated x
    # wsvo_ref: (EXP_DIM, FUSED_N) bf16  [scale*Wq_exp@Wk_exp^T | blockdiag(Wv)@Wout]
    # gt_ref  : (BS, BHS)          f32   constant 0/1 head-sum gather matrix
    # mask_ref: (BHS, BHS)         f32   additive block-diagonal mask (0 / -1e30)
    # bo_ref  : (1, OUT_DIM)       f32   out_proj bias
    # y_ref   : (BS, OUT_DIM)      f32
    x = x_ref[...]

    # Fused projection: one MXU weight push produces both the score-LHS and the
    # out_proj-folded V. Slices are lane-aligned (cut at lane 128), no relayout.
    proj = jnp.dot(x, wsvo_ref[...], preferred_element_type=jnp.float32)   # (BHS, FUSED_N)
    qs = proj[:, :EXP_DIM].astype(jnp.bfloat16)   # (BHS, EXP_DIM) scores LHS (scale folded in)
    v = proj[:, EXP_DIM:].astype(jnp.bfloat16)    # (BHS, OUT_DIM) V with out_proj folded in

    # Scores: full-depth K=128 contraction against x_exp. Contracting dims
    # ((1,),(1,)) lowers to a native trans_b vmatmul (no XLU transpose of x).
    s = lax.dot_general(qs, x, dimension_numbers=(((1,), (1,)), ((), ())),
                        preferred_element_type=jnp.float32)                # (BHS, BHS)
    s = s + mask_ref[...]   # only same-(batch,head) SEQxSEQ blocks stay finite

    # Row-wise softmax in f32; masked entries underflow to exactly 0.
    m = jnp.max(s, axis=-1, keepdims=True)
    p = jnp.exp(s - m)
    denom = jnp.sum(p, axis=-1, keepdims=True)
    p = p * pl.reciprocal(denom, approx=True)      # EUP slot; covered by test tolerance

    # PV: rows stay head-major; each row already carries its head's out_proj slice.
    o = jnp.dot(p.astype(jnp.bfloat16), v, preferred_element_type=jnp.float32)  # (BHS, OUT_DIM)

    # Sum per-head contributions back to (batch*seq) rows on the MXU, add bias.
    y = jnp.dot(gt_ref[...], o, preferred_element_type=jnp.float32) + bo_ref[...]
    y_ref[...] = y.astype(y_ref.dtype)


def prepare_params(w_qkv, w_out, b_out):
    """Weight-only operand prep. Run ONCE at parameter-load time (constant per model)."""
    H, HD, Din = N_HEADS, HEAD_DIM, IN_DIM
    w_q = w_qkv[:, 0 * ATT_DIM:1 * ATT_DIM]
    w_k = w_qkv[:, 1 * ATT_DIM:2 * ATT_DIM]
    w_v = w_qkv[:, 2 * ATT_DIM:3 * ATT_DIM]

    def head_major(w):  # (Din, H*HD) -> (H, Din, HD)
        return w.reshape(Din, H, HD).transpose(1, 0, 2)

    # wq_exp[(h,i), d] = W_q[i, h*HD+d]  => x_exp @ wq_exp == head-major Q
    wq_exp = head_major(w_q).reshape(H * Din, HD)
    wk_exp = head_major(w_k).reshape(H * Din, HD)
    scale = 1.0 / math.sqrt(HD)
    # W_s = scale * Wq_exp @ Wk_exp^T  => scores = (x_exp @ W_s) @ x_exp^T on diag blocks
    w_s = scale * (wq_exp @ wk_exp.T)                                   # (EXP_DIM, EXP_DIM)
    # W_vo[(h,i), o] = sum_d W_v[i, h*HD+d] * W_out[h*HD+d, o]  (out_proj folded into V)
    w_vo = jnp.einsum("hid,hdo->hio", head_major(w_v),
                      w_out.reshape(H, HD, OUT_DIM)).reshape(H * Din, OUT_DIM)
    wsvo = jnp.concatenate([w_s, w_vo], axis=1).astype(jnp.bfloat16)    # (EXP_DIM, FUSED_N)

    # gt[(b,n), (b',h,n')] = [b'==b][n'==n] : sums per-head output contributions.
    eye_bn = jnp.eye(BS, dtype=jnp.float32).reshape(BATCH, SEQ, BATCH, SEQ)
    gt = jnp.broadcast_to(eye_bn[:, :, :, None, :],
                          (BATCH, SEQ, BATCH, N_HEADS, SEQ)).reshape(BS, BHS)

    # Additive block-diagonal mask: 0 inside each (batch,head) SEQxSEQ block, -1e30 outside.
    blk = jnp.arange(BHS, dtype=jnp.int32) // SEQ
    mask_add = jnp.where(blk[:, None] == blk[None, :], 0.0, -1e30).astype(jnp.float32)

    bo2d = b_out.reshape(1, OUT_DIM).astype(jnp.float32)
    return wsvo, gt, mask_add, bo2d


def _expand_x(x):
    """Per-call layout prep: block-diagonal head-replicated x (rows are (b,h,n))."""
    B, N, Din = x.shape
    eye_h = jnp.eye(N_HEADS, dtype=x.dtype)
    # x_exp[(b,h,n), g*Din+i] = x[b,n,i] * [g==h]
    x_exp = jnp.einsum("bni,hg->bhngi", x, eye_h).reshape(B * N_HEADS * N, N_HEADS * Din)
    return x_exp.astype(jnp.bfloat16)


@jax.jit
def multihead_self_attention(x, wsvo, gt, mask_add, bo2d):
    """x: (B, N, in_dim); constant operands from prepare_params. Returns (B, N, out_dim)."""
    B, N, _ = x.shape
    x_exp = _expand_x(x)
    y2 = pl.pallas_call(
        msa_kernel,
        out_shape=jax.ShapeDtypeStruct((B * N, OUT_DIM), jnp.float32),
        grid_spec=pltpu.PrefetchScalarGridSpec(
            num_scalar_prefetch=0,
            grid=(1,),  # single fused step: per-step overhead dominates at this size
            in_specs=[
                pl.BlockSpec((BHS, EXP_DIM), lambda i: (0, 0)),
                pl.BlockSpec((EXP_DIM, FUSED_N), lambda i: (0, 0)),
                pl.BlockSpec((BS, BHS), lambda i: (0, 0)),
                pl.BlockSpec((BHS, BHS), lambda i: (0, 0)),
                pl.BlockSpec((1, OUT_DIM), lambda i: (0, 0)),
            ],
            out_specs=pl.BlockSpec((BS, OUT_DIM), lambda i: (0, 0)),
        ),
        compiler_params=pltpu.CompilerParams(
            dimension_semantics=("arbitrary",),
        ),
    )(x_exp, wsvo, gt, mask_add, bo2d)
    return y2.reshape(B, N, OUT_DIM)


def reference(x, w_qkv, w_out, b_out):
    """Pure-JAX reference mirroring the PyTorch forward."""
    B, N, _ = x.shape
    qkv = jnp.einsum("bnd,de->bne", x, w_qkv)
    q, k, v = jnp.split(qkv, 3, axis=-1)

    def to_heads(t):
        return t.reshape(B, N, N_HEADS, HEAD_DIM).transpose(0, 2, 1, 3)

    qh, kh, vh = to_heads(q), to_heads(k), to_heads(v)
    s = jnp.einsum("bhqd,bhkd->bhqk", qh, kh) / math.sqrt(HEAD_DIM)
    p = jax.nn.softmax(s, axis=-1)
    o = jnp.einsum("bhqk,bhkd->bhqd", p, vh)
    o = o.transpose(0, 2, 1, 3).reshape(B, N, ATT_DIM)
    return jnp.einsum("bnd,de->bne", o, w_out) + b_out


if __name__ == "__main__":
    key = jax.random.PRNGKey(0)
    kx, kq, kw, kb = jax.random.split(key, 4)

    x = jax.random.normal(kx, (BATCH, SEQ, IN_DIM), dtype=jnp.float32)
    # qkv_nn: torch Linear(in_dim, 3*att_dim, bias=False); kept pre-transposed (x @ W)
    w_qkv = jax.random.normal(kq, (IN_DIM, 3 * ATT_DIM), dtype=jnp.float32) * 0.1
    # out_proj: torch Linear(att_dim, out_dim) with bias; pre-transposed
    w_out = jax.random.normal(kw, (ATT_DIM, OUT_DIM), dtype=jnp.float32) * 0.1
    b_out = jax.random.normal(kb, (OUT_DIM,), dtype=jnp.float32) * 0.1

    params = prepare_params(w_qkv, w_out, b_out)   # once, at parameter-load time
    y = multihead_self_attention(x, *params)
    y = jax.block_until_ready(y)

    y_ref = reference(x, w_qkv, w_out, b_out)
    assert y.shape == (BATCH, SEQ, OUT_DIM)
    # tolerance covers bf16 MXU operands + the approximate EUP reciprocal in the softmax
    max_err = float(jnp.max(jnp.abs(y - y_ref)))
    assert jnp.allclose(y, y_ref, atol=2e-2, rtol=2e-2), (
        f"mismatch vs reference (max abs err {max_err:.3e})")
    print("KERNEL_OK")
</pallas_src>

<mosaic_0001>
module attributes {stable_mosaic.version = 11 : i64} {
  func.func @msa_kernel(%arg0: i32, %arg1: memref<64x128xbf16, #tpu.memory_space<vmem>>, %arg2: memref<128x160xbf16, #tpu.memory_space<vmem>>, %arg3: memref<16x64xf32, #tpu.memory_space<vmem>>, %arg4: memref<64x64xf32, #tpu.memory_space<vmem>>, %arg5: memref<1x32xf32, #tpu.memory_space<vmem>>, %arg6: memref<16x32xf32, #tpu.memory_space<vmem>>) attributes {dimension_semantics = [#tpu.dimension_semantics<arbitrary>], iteration_bounds = array<i64: 1>, scalar_prefetch = 0 : i64, scratch_operands = 0 : i64, tpu.core_type = #tpu.core_type<tc>, window_params = [{pipeline_mode = #tpu.pipeline_mode<synchronous>, transform_indices = @transform_0, window_bounds = array<i64: 64, 128>}, {pipeline_mode = #tpu.pipeline_mode<synchronous>, transform_indices = @transform_1, window_bounds = array<i64: 128, 160>}, {pipeline_mode = #tpu.pipeline_mode<synchronous>, transform_indices = @transform_2, window_bounds = array<i64: 16, 64>}, {pipeline_mode = #tpu.pipeline_mode<synchronous>, transform_indices = @transform_3, window_bounds = array<i64: 64, 64>}, {pipeline_mode = #tpu.pipeline_mode<synchronous>, transform_indices = @transform_4, window_bounds = array<i64: 1, 32>}, {pipeline_mode = #tpu.pipeline_mode<synchronous>, transform_indices = @transform_5, window_bounds = array<i64: 16, 32>}]} {
    %c0 = arith.constant 0 : index
    %c0_0 = arith.constant 0 : index
    %0 = vector.load %arg1[%c0, %c0_0] : memref<64x128xbf16, #tpu.memory_space<vmem>>, vector<64x128xbf16>
    %c0_1 = arith.constant 0 : index
    %c0_2 = arith.constant 0 : index
    %1 = vector.load %arg2[%c0_1, %c0_2] : memref<128x160xbf16, #tpu.memory_space<vmem>>, vector<128x160xbf16>
    %cst = arith.constant dense<0.000000e+00> : vector<64x160xf32>
    %2 = tpu.matmul %0, %1, %cst {dimension_numbers = #tpu.dot_dimension_numbers<[1], [0], [0], [1], [0, 0, 1, 1], [], []>} : vector<64x128xbf16>, vector<128x160xbf16>, vector<64x160xf32> -> vector<64x160xf32>
    %3 = vector.extract_strided_slice %2 {offsets = [0, 0], sizes = [64, 128], strides = [1, 1]} : vector<64x160xf32> to vector<64x128xf32>
    %4 = arith.truncf %3 : vector<64x128xf32> to vector<64x128xbf16>
    %5 = vector.extract_strided_slice %2 {offsets = [0, 128], sizes = [64, 32], strides = [1, 1]} : vector<64x160xf32> to vector<64x32xf32>
    %6 = arith.truncf %5 : vector<64x32xf32> to vector<64x32xbf16>
    %cst_3 = arith.constant dense<0.000000e+00> : vector<64x64xf32>
    %7 = tpu.matmul %4, %0, %cst_3 {dimension_numbers = #tpu.dot_dimension_numbers<[1], [1], [0], [0], [0, 0, 1, 0], [], []>} : vector<64x128xbf16>, vector<64x128xbf16>, vector<64x64xf32> -> vector<64x64xf32>
    %c0_4 = arith.constant 0 : index
    %c0_5 = arith.constant 0 : index
    %8 = vector.load %arg4[%c0_4, %c0_5] : memref<64x64xf32, #tpu.memory_space<vmem>>, vector<64x64xf32>
    %9 = arith.addf %7, %8 : vector<64x64xf32>
    %cst_6 = arith.constant dense<0xFF800000> : vector<64xf32>
    %10 = vector.multi_reduction <maximumf>, %9, %cst_6 [1] : vector<64x64xf32> to vector<64xf32>
    %11 = vector.shape_cast %10 : vector<64xf32> to vector<64x1xf32>
    %12 = vector.broadcast %11 : vector<64x1xf32> to vector<64x64xf32>
    %13 = arith.subf %9, %12 : vector<64x64xf32>
    %14 = math.exp %13 : vector<64x64xf32>
    %cst_7 = arith.constant dense<0.000000e+00> : vector<64xf32>
    %15 = vector.multi_reduction <add>, %14, %cst_7 [1] : vector<64x64xf32> to vector<64xf32>
    %16 = vector.shape_cast %15 : vector<64xf32> to vector<64x1xf32>
    %17 = tpu.reciprocal %16 {approx = true} : vector<64x1xf32> -> vector<64x1xf32>
    %18 = vector.broadcast %17 : vector<64x1xf32> to vector<64x64xf32>
    %19 = arith.mulf %14, %18 : vector<64x64xf32>
    %20 = arith.truncf %19 : vector<64x64xf32> to vector<64x64xbf16>
    %cst_8 = arith.constant dense<0.000000e+00> : vector<64x32xf32>
    %21 = tpu.matmul %20, %6, %cst_8 {dimension_numbers = #tpu.dot_dimension_numbers<[1], [0], [0], [1], [0, 0, 1, 1], [], []>} : vector<64x64xbf16>, vector<64x32xbf16>, vector<64x32xf32> -> vector<64x32xf32>
    %c0_9 = arith.constant 0 : index
    %c0_10 = arith.constant 0 : index
    %22 = vector.load %arg3[%c0_9, %c0_10] : memref<16x64xf32, #tpu.memory_space<vmem>>, vector<16x64xf32>
    %cst_11 = arith.constant dense<0.000000e+00> : vector<16x32xf32>
    %23 = tpu.matmul %22, %21, %cst_11 {dimension_numbers = #tpu.dot_dimension_numbers<[1], [0], [0], [1], [0, 0, 1, 1], [], []>} : vector<16x64xf32>, vector<64x32xf32>, vector<16x32xf32> -> vector<16x32xf32>
    %c0_12 = arith.constant 0 : index
    %c0_13 = arith.constant 0 : index
    %24 = vector.load %arg5[%c0_12, %c0_13] : memref<1x32xf32, #tpu.memory_space<vmem>>, vector<1x32xf32>
    %25 = vector.broadcast %24 : vector<1x32xf32> to vector<16x32xf32>
    %26 = arith.addf %23, %25 : vector<16x32xf32>
    %c0_14 = arith.constant 0 : index
    %c0_15 = arith.constant 0 : index
    %27 = vector.load %arg6[%c0_14, %c0_15] : memref<16x32xf32, #tpu.memory_space<vmem>>, vector<16x32xf32>
    tpu.vector_store %arg6[%c0_14, %c0_15], %26 {strides = array<i32>} : memref<16x32xf32, #tpu.memory_space<vmem>>, vector<16x32xf32>,
    return
  }
  func.func @transform_0(%arg0: i32) -> (i32, i32) {
    %c0_i32 = arith.constant 0 : i32
    %c0_i32_0 = arith.constant 0 : i32
    %c0_i32_1 = arith.constant 0 : i32
    return %c0_i32, %c0_i32_0 : i32, i32
  }
  func.func @transform_1(%arg0: i32) -> (i32, i32) {
    %c0_i32 = arith.constant 0 : i32
    %c0_i32_0 = arith.constant 0 : i32
    %c0_i32_1 = arith.constant 0 : i32
    return %c0_i32, %c0_i32_0 : i32, i32
  }
  func.func @transform_2(%arg0: i32) -> (i32, i32) {
    %c0_i32 = arith.constant 0 : i32
    %c0_i32_0 = arith.constant 0 : i32
    %c0_i32_1 = arith.constant 0 : i32
    return %c0_i32, %c0_i32_0 : i32, i32
  }
  func.func @transform_3(%arg0: i32) -> (i32, i32) {
    %c0_i32 = arith.constant 0 : i32
    %c0_i32_0 = arith.constant 0 : i32
    %c0_i32_1 = arith.constant 0 : i32
    return %c0_i32, %c0_i32_0 : i32, i32
  }
  func.func @transform_4(%arg0: i32) -> (i32, i32) {
    %c0_i32 = arith.constant 0 : i32
    %c0_i32_0 = arith.constant 0 : i32
    %c0_i32_1 = arith.constant 0 : i32
    return %c0_i32, %c0_i32_0 : i32, i32
  }
  func.func @transform_5(%arg0: i32) -> (i32, i32) {
    %c0_i32 = arith.constant 0 : i32
    %c0_i32_0 = arith.constant 0 : i32
    %c0_i32_1 = arith.constant 0 : i32
    return %c0_i32, %c0_i32_0 : i32, i32
  }
}

</mosaic_0001>

<bundles_post_ra>
// kernel: multihead_self_attention.1
= control target key start
LH: loop header
LB: loop body
LE: loop exit
PB: predicated region body
PF: predicated region fallthrough
CT: control target
= control target key end

     0   :  { %v791_v2 = vmov 0   ;;  %s952_s0 = inlined_call_operand.vmem [shape: bf16[64,128], index: 0, kind: input, shape index: {}]   ;;  %s953_s1 = inlined_call_operand.vmem [shape: bf16[128,160], index: 1, kind: input, shape index: {}]   ;;  %s954_s2 = inlined_call_operand.vmem [shape: f32[16,64], index: 2, kind: input, shape index: {}]   ;;  %s955_s3 = inlined_call_operand.vmem [shape: f32[64,64], index: 3, kind: input, shape index: {}]   ;;  %s956_s4 = inlined_call_operand.vmem [shape: f32[1,32], index: 4, kind: input, shape index: {}]   ;;  %s957_s5 = inlined_call_operand.hbm [shape: f32[16,32], index: 5, kind: output, shape index: {}]  }
   0x1   :  { %v707_v0 = vld [vmem:[%s953_s1 + $0x4] ss:$8 sps:$4 sm:$0xff]   ;;  %v709_v1 = vld [vmem:[%s953_s1] ss:$8 sps:$4 sm:$0xff]   ;;  %182 = vmatprep.mubr.bf16.mxu0 %v791_v2  ;;  %v710_v3 = vld [vmem:[%s953_s1 + $0x14] ss:$8 sps:$4 sm:$0xff]  }
   0x2   :  { %150 = vmatprep.subr.bf16.mxu0 %v707_v0  ;;  %v712_v4 = vld [vmem:[%s953_s1 + $0x10] ss:$8 sps:$4 sm:$0xff]   ;;  %v713_v5 = vld [vmem:[%s953_s1 + $0x24] ss:$8 sps:$4 sm:$0xff]   ;;  %v715_v6 = vld [vmem:[%s953_s1 + $0x20] ss:$8 sps:$4 sm:$0xff]  }
   0x3   :  { %151 = vmatpush1.bf16.msra.mxu0 %v709_v1  ;;  %v716_v7 = vld [vmem:[%s953_s1 + $0x34] ss:$8 sps:$4 sm:$0xff]   ;;  %v718_v8 = vld [vmem:[%s953_s1 + $0x30] ss:$8 sps:$4 sm:$0xff]   ;;  %v731_v9 = vld [vmem:[%s952_s0] sm:$0xff]  }
   0x4   :  { %152 = vmatprep.subr.bf16.mxu0 %v710_v3  ;;  %v719_v10 = vld [vmem:[%s953_s1 + $0x44] ss:$8 sps:$4 sm:$0xff]   ;;  %636 = vmatprep.subr.bf16.mxu1 %v731_v9 }
   0x5   :  { %v732_v11 = vld [vmem:[%s952_s0 + $0x8] sm:$0xff]   ;;  %637 = vmatpush3.bf16.xpose.msra.mxu1 %v731_v9 }
   0x7   :  { %153 = vmatpush1.bf16.msra.mxu0 %v712_v4 }
   0x8   :  { %154 = vmatprep.subr.bf16.mxu0 %v713_v5 }
   0xb   :  { %155 = vmatpush1.bf16.msra.mxu0 %v715_v6 }
   0xc   :  { %156 = vmatprep.subr.bf16.mxu0 %v716_v7 }
   0xd   :  { %10 = vsyncpa [#allocation3], 0  ;;  %v721_v12 = vld [vmem:[%s953_s1 + $0x40] ss:$8 sps:$4 sm:$0xff]   ;;  %638 = vmatprep.subr.bf16.mxu1 %v732_v11  ;;  %v722_v13 = vld [vmem:[%s953_s1 + $0x54] ss:$8 sps:$4 sm:$0xff]  }
   0xe   :  { %v724_v14 = vld [vmem:[%s953_s1 + $0x50] ss:$8 sps:$4 sm:$0xff]   ;;  %v725_v15 = vld [vmem:[%s953_s1 + $0x64] ss:$8 sps:$4 sm:$0xff]   ;;  %639 = vmatpush3.bf16.xpose.msra.mxu1 %v732_v11  ;;  %v727_v17 = vld [vmem:[%s953_s1 + $0x60] ss:$8 sps:$4 sm:$0xff]  }
   0xf   :  { %157 = vmatpush1.bf16.msra.mxu0 %v718_v8  ;;  %v733_v16 = vld [vmem:[%s952_s0 + $0x10] sm:$0xff]   ;;  %v734_v20 = vld [vmem:[%s952_s0 + $0x18] sm:$0xff]   ;;  %v231_v46 = vld [vmem:[%s955_s3] sm:$0xff]  ;;  %vm304_vm0 = vcmask 523264   ;;  %s792_s27 = smov [#allocation2]   ;;  %vm564_vm1 = vcmask 261120  }
  0x10   :  { %158 = vmatprep.subr.bf16.mxu0 %v719_v10  ;;  %640 = vmatprep.subr.bf16.mxu1 %v733_v16  ;;  %v728_v18 = vld [vmem:[%s953_s1 + $0x74] ss:$8 sps:$4 sm:$0xff]   ;;  %v730_v19 = vld [vmem:[%s953_s1 + $0x70] ss:$8 sps:$4 sm:$0xff]   ;;  %v232_v51 = vld [vmem:[%s955_s3 + $0x8] sm:$0xff]  ;;  %s572_s28 = sshll.u32 %s792_s27, 4  ;;  %s573_s28 = int_to_ptr.vmem [resolvable:$true] %s572_s28 }
  0x11   :  { %v233_v45 = vld [vmem:[%s955_s3 + $0x10] sm:$0xff]  ;;  %v234_v48 = vld [vmem:[%s955_s3 + $0x18] sm:$0xff]  ;;  %v235_v61 = vld [vmem:[%s955_s3 + $0x20] sm:$0xff]  ;;  %s767_s29 = scalar_lea.vmem %s573_s28, 256  ;;  %p772_p1 = scmp.lt.s32.totalorder %s573_s28, %s573_s28 }
  0x12   :  { %v237_v63 = vld [vmem:[%s955_s3 + $0x30] sm:$0xff]  ;;  %v236_v1 = vld [vmem:[%s955_s3 + $0x28] sm:$0xff]  ;;  %v238_v4 = vld [vmem:[%s955_s3 + $0x38] sm:$0xff]  ;;  %p768_p0 = scmp.ne.s32.totalorder %s573_s28, %s767_s29  ;;  %p773_p2 = scmp.lt.s32.totalorder %s767_s29, %s767_s29 }
  0x13   :  { %159 = vmatpush1.bf16.msra.mxu0 %v721_v12 }
  0x14   :  { %160 = vmatprep.subr.bf16.mxu0 %v722_v13  ;;  %p774_p3 = por %p773_p2, %p772_p1 }
  0x16   :  { %641 = vmatpush3.bf16.xpose.msra.mxu1 %v733_v16  ;;  %p775_p4 = pnand %p774_p3, %p768_p0 }
  0x17   :  { %161 = vmatpush1.bf16.msra.mxu0 %v724_v14  ;;  %642 = vmatprep.subr.bf16.mxu1 %v734_v20 }
  0x18   :  { %162 = vmatprep.subr.bf16.mxu0 %v725_v15 }
  0x1b   :  { %163 = vmatpush1.bf16.msra.mxu0 %v727_v17 }
  0x1c   :  { %164 = vmatprep.subr.bf16.mxu0 %v728_v18 }
  0x1e   :  { %643 = vmatpush3.bf16.xpose.msra.mxu1 %v734_v20 }
  0x1f   :  { %165 = vmatpush1.bf16.msra.mxu0 %v730_v19 }
  0x22   :  { %183 = vmatmul.mubr.bf16.vlgmr.msra.gmra.mrb[0].mxu0 %v731_v9 }
  0x23   :  { %192 = vmatprep.mubr.bf16.mxu0 %v791_v2 }
  0x2a   :  { %193 = vmatmul.mubr.bf16.gmra.mrb[4].mxu0 %v732_v11 }
  0x2b   :  { %202 = vmatprep.mubr.bf16.mxu0 %v791_v2 }
  0x32   :  { %203 = vmatmul.mubr.bf16.gmra.mrb[8].mxu0 %v733_v16 }
  0x33   :  { %212 = vmatprep.mubr.bf16.mxu0 %v791_v2 }
  0x3a   :  { %213 = vmatmul.mubr.bf16.gmra.mrb[12].mxu0 %v734_v20 }
  0xf5   :  { %v184_v21 = vpop.f32.mrb[0].mxu0 }
  0xf6   :  { %v186_v22 = vpop.f32.mrb[1].mxu0 }
  0xf7   :  { %v188_v23 = vpop.f32.mrb[2].mxu0 }
  0xf8   :  { %v190_v24 = vpop.f32.mrb[3].mxu0  ;;  %v223_v25 = vpack.c.bf16 %v188_v23, %v184_v21 }
  0xf9   :  { %v227_v26 = vpack.c.bf16 %v190_v24, %v186_v22 }
  0xfa   :  { %644 = vmatprep.mubr.bf16.mxu1 %v223_v25 }
  0xfb   :  { %652 = vmatprep.subr.bf16.mxu1 %v227_v26 }
  0xfd   :  { %v194_v27 = vpop.f32.mrb[4].mxu0 }
  0xfe   :  { %v196_v28 = vpop.f32.mrb[5].mxu0 }
  0xff   :  { %v198_v29 = vpop.f32.mrb[6].mxu0 }
 0x100   :  { %v224_v30 = vpack.c.bf16 %v198_v29, %v194_v27  ;;  %v200_v31 = vpop.f32.mrb[7].mxu0 }
 0x101   :  { %v228_v32 = vpack.c.bf16 %v200_v31, %v196_v28 }
 0x102   :  { %645 = vmatmul.mubr.bf16.vlgmr.msra.gmra.mrb[0].mxu1 %v224_v30 }
 0x103   :  { %653 = vmatpush3.bf16.msra.mxu1 %v227_v26 }
 0x104   :  { %654 = vmatprep.subr.bf16.mxu1 %v228_v32 }
 0x105   :  { %v204_v33 = vpop.f32.mrb[8].mxu0 }
 0x106   :  { %v206_v34 = vpop.f32.mrb[9].mxu0 }
 0x107   :  { %655 = vmatpush3.bf16.msra.mxu1 %v228_v32  ;;  %v208_v35 = vpop.f32.mrb[10].mxu0 }
 0x108   :  { %v225_v36 = vpack.c.bf16 %v208_v35, %v204_v33  ;;  %v210_v37 = vpop.f32.mrb[11].mxu0 }
 0x109   :  { %v229_v38 = vpack.c.bf16 %v210_v37, %v206_v34 }
 0x10a   :  { %648 = vmatprep.mubr.bf16.mxu1 %v225_v36 }
 0x10b   :  { %656 = vmatprep.subr.bf16.mxu1 %v229_v38 }
 0x10c   :  { %657 = vmatpush3.bf16.msra.mxu1 %v229_v38 }
 0x10d   :  { %v214_v39 = vpop.f32.mrb[12].mxu0 }
 0x10e   :  { %v216_v40 = vpop.f32.mrb[13].mxu0 }
 0x10f   :  { %v218_v41 = vpop.f32.mrb[14].mxu0 }
 0x110   :  { %v226_v42 = vpack.c.bf16 %v218_v41, %v214_v39  ;;  %v220_v43 = vpop.f32.mrb[15].mxu0 }
 0x111   :  { %v230_v44 = vpack.c.bf16 %v220_v43, %v216_v40 }
 0x112   :  { %649 = vmatmul.mubr.bf16.gmra.mrb[4].mxu1 %v226_v42 }
 0x113   :  { %658 = vmatprep.subr.bf16.mxu1 %v230_v44 }
 0x114   :  { %659 = vmatpush3.bf16.msra.mxu1 %v230_v44 }
 0x1d5   :  { %v646_v47 = vpop.f32.mrb[0].mxu1 }
 0x1d6   :  { %v282_v49 = vadd.f32 %v646_v47, %v233_v45  ;;  %v273_v50 = vpop.f32.mrb[1].mxu1 }
 0x1d7   :  { %v274_v52 = vadd.f32 %v273_v50, %v231_v46  ;;  %v647_v53 = vpop.f32.mrb[2].mxu1 }
 0x1d8   :  { %v285_v54 = vadd.f32 %v647_v53, %v234_v48  ;;  %v276_v55 = vpop.f32.mrb[3].mxu1  ;;  %v311_v56 = vsel %vm304_vm0, %v282_v49, -inf }
 0x1d9   :  { %v277_v57 = vadd.f32 %v276_v55, %v232_v51  ;;  %312 = vmax.xlane.f32.xlu1 %v311_v56  ;;  %v305_v58 = vsel %vm304_vm0, %v274_v52, -inf }
 0x1da   :  { %306 = vmax.xlane.f32.xlu0 %v305_v58  ;;  %v314_v59 = vsel %vm304_vm0, %v285_v54, -inf }
 0x1db   :  { %v308_v60 = vsel %vm304_vm0, %v277_v57, -inf }
 0x1dd   :  { %315 = vmax.xlane.f32.xlu1 %v314_v59 }
 0x1de   :  { %309 = vmax.xlane.f32.xlu0 %v308_v60 }
 0x1e5   :  { %v650_v62 = vpop.f32.mrb[4].mxu1 }
 0x1e6   :  { %v289_v0 = vpop.f32.mrb[5].mxu1  ;;  %v298_v6 = vadd.f32 %v650_v62, %v237_v63 }
 0x1e7   :  { %v290_v2 = vadd.f32 %v289_v0, %v235_v61  ;;  %v651_v3 = vpop.f32.mrb[6].mxu1 }
 0x1e8   :  { %v292_v5 = vpop.f32.mrb[7].mxu1  ;;  %v301_v9 = vadd.f32 %v651_v3, %v238_v4  ;;  %v323_v11 = vsel %vm304_vm0, %v298_v6, -inf }
 0x1e9   :  { %v293_v7 = vadd.f32 %v292_v5, %v236_v1  ;;  %v317_v8 = vsel %vm304_vm0, %v290_v2, -inf }
 0x1ea   :  { %318 = vmax.xlane.f32.xlu0 %v317_v8  ;;  %v326_v12 = vsel %vm304_vm0, %v301_v9, -inf }
 0x1eb   :  { %v320_v10 = vsel %vm304_vm0, %v293_v7, -inf }
 0x1ec   :  { %321 = vmax.xlane.f32.xlu1 %v320_v10 }
 0x1ee   :  { %324 = vmax.xlane.f32.xlu0 %v323_v11 }
 0x1f0   :  { %327 = vmax.xlane.f32.xlu1 %v326_v12 }
 0x266   :  { %v313_v13 = vpop.xlane.xlu1 %312 }
 0x267   :  { %v331_v14 = vsub.f32 %v282_v49, %v313_v13  ;;  %v307_v15 = vpop.xlane.xlu0 %306 }
 0x268   :  { %v329_v16 = vsub.f32 %v274_v52, %v307_v15 }
 0x269   :  { %v341_v17 = vmul.f32 1.442695, %v331_v14 }
 0x26a   :  { %v337_v18 = vmul.f32 1.442695, %v329_v16  ;;  %v316_v19 = vpop.xlane.xlu1 %315 }
 0x26b   :  { %v332_v20 = vsub.f32 %v285_v54, %v316_v19  ;;  %v310_v21 = vpop.xlane.xlu0 %309 }
 0x26c   :  { %735 = vpow2.f32 %v337_v18  ;;  %v330_v22 = vsub.f32 %v277_v57, %v310_v21 }
 0x26d   :  { %737 = vpow2.f32 %v341_v17  ;;  %v343_v23 = vmul.f32 1.442695, %v332_v20  ;;  %v474_v17 = vld [vmem:[%s954_s2] sm:$0xff] }
 0x26e   :  { %v339_v24 = vmul.f32 1.442695, %v330_v22  ;;  %684 = vmatprep.mubr.msk.f32.mxu0 %vm304_vm0, %v474_v17 }
 0x270   :  { %739 = vpow2.f32 %v339_v24 }
 0x271   :  { %741 = vpow2.f32 %v343_v23 }
 0x276   :  { %v736_v25 = vpop.eup %735 }
 0x277   :  { %v319_v26 = vpop.xlane.xlu0 %318  ;;  %v353_v27 = vsel %vm304_vm0, %v736_v25, 0.0  ;;  %v738_v28 = vpop.eup %737 }
 0x278   :  { %v333_v29 = vsub.f32 %v290_v2, %v319_v26  ;;  %354 = vadd.xlane.f32.xlu0 %v353_v27  ;;  %v359_v36 = vsel %vm304_vm0, %v738_v28, 0.0 }
 0x279   :  { %v322_v30 = vpop.xlane.xlu1 %321 }
 0x27a   :  { %v740_v31 = vpop.eup %739  ;;  %v345_v32 = vmul.f32 1.442695, %v333_v29  ;;  %v334_v33 = vsub.f32 %v293_v7, %v322_v30  ;;  %v475_v30 = vld [vmem:[%s954_s2 + $0x8] sm:$0xff] }
 0x27b   :  { %v325_v34 = vpop.xlane.xlu0 %324  ;;  %v356_v35 = vsel %vm304_vm0, %v740_v31, 0.0  ;;  %v742_v37 = vpop.eup %741 }
 0x27c   :  { %743 = vpow2.f32 %v345_v32  ;;  %v347_v38 = vmul.f32 1.442695, %v334_v33  ;;  %v335_v39 = vsub.f32 %v298_v6, %v325_v34  ;;  %357 = vadd.xlane.f32.xlu1 %v356_v35  ;;  %360 = vadd.xlane.f32.xlu0 %v359_v36  ;;  %v362_v43 = vsel %vm304_vm0, %v742_v37, 0.0 }
 0x27d   :  { %v328_v40 = vpop.xlane.xlu1 %327 }
 0x27e   :  { %745 = vpow2.f32 %v347_v38  ;;  %v349_v41 = vmul.f32 1.442695, %v335_v39  ;;  %v336_v42 = vsub.f32 %v301_v9, %v328_v40 }
 0x280   :  { %747 = vpow2.f32 %v349_v41  ;;  %v351_v44 = vmul.f32 1.442695, %v336_v42  ;;  %363 = vadd.xlane.f32.xlu1 %v362_v43 }
 0x282   :  { %749 = vpow2.f32 %v351_v44 }
 0x286   :  { %v744_v45 = vpop.eup %743 }
 0x287   :  { %v365_v46 = vsel %vm304_vm0, %v744_v45, 0.0 }
 0x288   :  { %v746_v47 = vpop.eup %745  ;;  %366 = vadd.xlane.f32.xlu0 %v365_v46 }
 0x289   :  { %v368_v48 = vsel %vm304_vm0, %v746_v47, 0.0 }
 0x28a   :  { %v748_v49 = vpop.eup %747  ;;  %369 = vadd.xlane.f32.xlu1 %v368_v48 }
 0x28b   :  { %v371_v50 = vsel %vm304_vm0, %v748_v49, 0.0 }
 0x28c   :  { %v750_v51 = vpop.eup %749  ;;  %372 = vadd.xlane.f32.xlu0 %v371_v50 }
 0x28d   :  { %v374_v52 = vsel %vm304_vm0, %v750_v51, 0.0 }
 0x28e   :  { %375 = vadd.xlane.f32.xlu1 %v374_v52 }
 0x305   :  { %v355_v53 = vpop.xlane.xlu0 %354 }
 0x306   :  { %751 = vrcp.f32 %v355_v53 }
 0x309   :  { %v358_v54 = vpop.xlane.xlu1 %357  ;;  %v361_v55 = vpop.xlane.xlu0 %360 }
 0x30a   :  { %753 = vrcp.f32 %v358_v54 }
 0x30b   :  { %755 = vrcp.f32 %v361_v55 }
 0x30d   :  { %v364_v56 = vpop.xlane.xlu1 %363 }
 0x30e   :  { %757 = vrcp.f32 %v364_v56 }
 0x310   :  { %v752_v57 = vpop.eup %751 }
 0x311   :  { %v385_v60 = vmul.f32 %v752_v57, %v736_v25 }
 0x314   :  { %v754_v58 = vpop.eup %753 }
 0x315   :  { %v367_v59 = vpop.xlane.xlu0 %366  ;;  %v386_v61 = vmul.f32 %v754_v58, %v740_v31  ;;  %v756_v62 = vpop.eup %755  ;;  %v607_v31 = vld [vmem:[%s956_s4] ss:$0 sm:$0xff] }
 0x316   :  { %759 = vrcp.f32 %v367_v59  ;;  %v387_v2 = vmul.f32 %v756_v62, %v738_v28 }
 0x317   :  { %v370_v63 = vpop.xlane.xlu1 %369  ;;  %v393_v0 = vpack.c.bf16 %v386_v61, %v385_v60 }
 0x318   :  { %v758_v1 = vpop.eup %757  ;;  %761 = vrcp.f32 %v370_v63 }
 0x319   :  { %v388_v3 = vmul.f32 %v758_v1, %v742_v37  ;;  %660 = vmatprep.mubr.msk.bf16.mxu1 %vm304_vm0, %v393_v0  ;;  %v373_v4 = vpop.xlane.xlu0 %372 }
 0x31a   :  { %763 = vrcp.f32 %v373_v4 }
 0x31b   :  { %v394_v5 = vpack.c.bf16 %v388_v3, %v387_v2  ;;  %v376_v6 = vpop.xlane.xlu1 %375 }
 0x31c   :  { %765 = vrcp.f32 %v376_v6 }
 0x31d   :  { %661 = vmatmul.mubr.msk.bf16.vlgmr.msra.gmra.mrb[8].mxu1 %vm304_vm0, %v394_v5 }
 0x320   :  { %v760_v7 = vpop.eup %759 }
 0x321   :  { %v389_v9 = vmul.f32 %v760_v7, %v744_v45 }
 0x322   :  { %v762_v8 = vpop.eup %761 }
 0x323   :  { %v390_v10 = vmul.f32 %v762_v8, %v746_v47 }
 0x324   :  { %v764_v11 = vpop.eup %763 }
 0x325   :  { %v395_v12 = vpack.c.bf16 %v390_v10, %v389_v9  ;;  %v391_v14 = vmul.f32 %v764_v11, %v748_v49 }
 0x326   :  { %v766_v13 = vpop.eup %765 }
 0x327   :  { %664 = vmatprep.mubr.msk.bf16.mxu1 %vm304_vm0, %v395_v12  ;;  %v392_v15 = vmul.f32 %v766_v13, %v750_v51 }
 0x329   :  { %v396_v16 = vpack.c.bf16 %v392_v15, %v391_v14 }
 0x32b   :  { %665 = vmatmul.mubr.msk.bf16.gmra.mrb[12].mxu1 %vm304_vm0, %v396_v16 }
 0x3f0   :  { %v662_v18 = vpop.f32.mrb[8].mxu1 }
 0x3f1   :  { %v443_v19 = vpop.f32.mrb[9].mxu1 }
 0x3f2   :  { %v663_v20 = vpop.f32.mrb[10].mxu1 }
 0x3f3   :  { %v691_v21 = vpack.c.bf16 %v663_v20, %v662_v18  ;;  %v446_v22 = vpop.f32.mrb[11].mxu1 }
 0x3f4   :  { %v687_v23 = vpack.c.bf16 %v446_v22, %v443_v19 }
 0x3f6   :  { %688 = vmatprep.subr.bf16.mxu0 %v687_v23 }
 0x3f7   :  { %690 = vmatpush3.bf16.msra.mxu0 %v687_v23 }
 0x3f8   :  { %692 = vmatprep.subr.bf16.mxu0 %v691_v21 }
 0x3fb   :  { %694 = vmatpush3.bf16.msra.mxu0 %v691_v21 }
 0x3fe   :  { %v666_v24 = vpop.f32.mrb[12].mxu1 }
 0x3ff   :  { %v459_v25 = vpop.f32.mrb[13].mxu1 }
 0x400   :  { %v667_v26 = vpop.f32.mrb[14].mxu1 }
 0x401   :  { %v699_v27 = vpack.c.bf16 %v667_v26, %v666_v24  ;;  %v462_v28 = vpop.f32.mrb[15].mxu1 }
 0x402   :  { %v695_v29 = vpack.c.bf16 %v462_v28, %v459_v25 }
 0x404   :  { %696 = vmatprep.subr.bf16.mxu0 %v695_v29 }
 0x405   :  { %698 = vmatpush3.bf16.msra.mxu0 %v695_v29 }
 0x406   :  { %700 = vmatprep.subr.bf16.mxu0 %v699_v27 }
 0x409   :  { %702 = vmatpush3.bf16.msra.mxu0 %v699_v27 }
 0x40c   :  { %685 = vmatmul.mubr.msk.f32.vlgmr.msra.gmra.mrb[16].mxu0 %vm304_vm0, %v475_v30 }
 0x4df   :  { %v686_v32 = vpop.f32.mrb[16].mxu0 }
 0x4e0   :  { %v561_v33 = vadd.f32 %v686_v32, %v607_v31  ;;  %v555_v34 = vpop.f32.mrb[17].mxu0 }
 0x4e1   :  { %v556_v35 = vadd.f32 %v607_v31, %v555_v34 }
 0x4e2   :  { %566 = vst.msk [vmem:[#allocation2 + $0x8] sm:$0xff] %vm564_vm1, %v561_v33 }
 0x4e3   :  { %565 = vst.msk [vmem:[#allocation2] sm:$0xff] %vm564_vm1, %v556_v35 }
 0x4e4   :  { %778 = shalt.err (!%p775_p4)
}
 0x4e5   :  { %s779_s4 = scalar_lea.hbm %s957_s5, 256 }
 0x4e6   :  { %p780_p5 = scmp.ne.s32.totalorder %s957_s5, %s779_s4  ;;  %p783_p6 = scmp.lt.u32.totalorder %s779_s4, %s957_s5 }
 0x4e8   :  { %p785_p7 = pnand %p783_p6, %p780_p5 }
 0x4ea   :  { %788 = shalt.err (!%p785_p7)
}
 0x4eb   :  { %s793_s8 = smov 128   ;;  %s794_s9 = smov 8  }
 0x4ec   :  { %578 = dma.vmem_to_hbm [thread:$0]  %s573_s28, 256, %s957_s5, [#allocation3], %s793_s8, %s793_s8, %s794_s9  }
 0x4ed   :  { %789 = dma.done.wait [#allocation3], 256  }
 0x4ee   :  { %790 = vsyncadd [#allocation3], 4294967040 }
 0x4ef   :  { %582 = vsyncpa [#allocation3], 1 }

</bundles_post_ra>
